<compile_context>
chip_gen: v6e
topology: v6e:2x2x1
jax: 0.10.0
libtpu: 0.0.40
codegen_flags: <defaults>
</compile_context>

<pallas_src>
import jax
import jax.numpy as jnp
from jax.experimental import pallas as pl
from jax.experimental.pallas import tpu as pltpu


# ----------------------------------------------------------------------------
# Stage 1: online softmax(K over L) + ctx = Ksm @ V^T, head-masked, transposed.
# ----------------------------------------------------------------------------
def _ctx_kernel(xf_ref, wk_ref, bk_ref, wv_ref, bv_ref, hm_ref,
                ctx_ref, m_sc, s_sc, acc_sc):
    li = pl.program_id(1)

    @pl.when(li == 0)
    def _():
        m_sc[...] = jnp.full_like(m_sc, -jnp.inf)
        s_sc[...] = jnp.zeros_like(s_sc)
        acc_sc[...] = jnp.zeros_like(acc_sc)

    xf = xf_ref[...]                                            # (C, tl)
    k = jnp.dot(wk_ref[...], xf,
                preferred_element_type=jnp.float32) + bk_ref[...]
    v = jnp.dot(wv_ref[...], xf,
                preferred_element_type=jnp.float32) + bv_ref[...]

    # Online softmax over the L (lane) axis, per K channel row.
    m_new = jnp.maximum(m_sc[...], jnp.max(k, axis=1, keepdims=True))   # (C,1)
    alpha = jnp.exp(m_sc[...] - m_new)
    p = jnp.exp(k - m_new)                                              # (C,tl)
    s_sc[...] = alpha * s_sc[...] + jnp.sum(p, axis=1, keepdims=True)
    # acc[k_ch, v_ch] += sum_l p[k_ch, l] * v[v_ch, l]
    # (contract the lane axes of both operands -> MXU, no materialized .T)
    acc_sc[...] = alpha * acc_sc[...] + jax.lax.dot_general(
        p, v, dimension_numbers=(((1,), (1,)), ((), ())),
        preferred_element_type=jnp.float32)
    m_sc[...] = m_new

    @pl.when(li == pl.num_programs(1) - 1)
    def _():
        ctx = (acc_sc[...] / s_sc[...]) * hm_ref[...]   # normalize + head mask
        # Store transposed so stage 2 consumes it with a plain (C,C)@(C,tl) dot.
        ctx_ref[...] = ctx.T


# ----------------------------------------------------------------------------
# Stage 2: Q softmax (per head, no head loop), attention readout, FFN, conv.
# ----------------------------------------------------------------------------
def _stream_kernel(xr_ref, ctx_ref, hm_ref, wq_ref, bq_ref, wr_ref, br_ref,
                   w1_ref, b1_ref, wc12_ref, wc2_ref, bc_ref, out_ref):
    f32 = jnp.float32
    cdt = wq_ref.dtype                          # MXU operand dtype (f32/bf16)

    def mm(w_ref, x):
        return jnp.dot(w_ref[...], x.astype(cdt), preferred_element_type=f32)

    xr = xr_ref[...]                            # (C, tl)

    # ---- Q projection + per-head softmax over channels (no head loop) ------
    q = mm(wq_ref, xr) + bq_ref[...]            # (C, tl), f32
    # Subtracting the per-position max over ALL channels is constant within
    # each head, so each head's softmax is unchanged and stays stable.
    e = jnp.exp(q - jnp.max(q, axis=0, keepdims=True))
    # Per-head denominators via a resident block-diagonal ones matrix (kept
    # f32 for softmax stability even in bf16 compute mode).
    denom = jnp.dot(hm_ref[...], e, preferred_element_type=f32)   # (C, tl)
    qsm = e / denom

    # attended[v, l] = sum_k ctx[k, v] * qsm[k, l]; ctx_ref holds ctx^T (f32).
    attended = jnp.dot(ctx_ref[...].astype(cdt), qsm.astype(cdt),
                       preferred_element_type=f32)                # (C, tl)

    # Reprojection + residual with x_rgb.
    attn = mm(wr_ref, attended) + br_ref[...] + xr.astype(f32)

    # ---- PositionwiseConv + final Conv3d(2C, C, 1), second half folded ------
    # (Wc1 @ W2) and (Wc1 @ b2 + bc) are pre-folded on the host.
    h1 = jnp.maximum(mm(w1_ref, attn) + b1_ref[...], 0.0)
    out = mm(wc12_ref, h1) + mm(wc2_ref, attn) + bc_ref[...]
    out_ref[...] = out.astype(out_ref.dtype)


# ----------------------------------------------------------------------------
# Wrapper
# ----------------------------------------------------------------------------
def _pick_tile(L, block_l):
    """Largest multiple-of-128 divisor of L that is <= block_l, else L."""
    if L % 128 != 0:
        return L
    tl = max((min(block_l, L) // 128) * 128, 128)
    while L % tl != 0:
        tl -= 128
    return tl


def resnet_attn_forward(x_rgb, x_flow, params, *, n_heads,
                        block_l=1024, compute_dtype=jnp.float32,
                        vmem_limit_bytes=None):
    """x_rgb / x_flow: (N, C, T, H, W) -> (N, C, T, H, W)."""
    N, C, T, H, W = x_rgb.shape
    assert C % n_heads == 0
    L = T * H * W

    (wq, bq, wk, bk, wv, bv, wr, br,
     w1, b1, w2, b2, wc1, wc2, bc) = [p.astype(jnp.float32) for p in params]

    # Host-side fold of the last FFN matmul into the final conv (exact algebra):
    #   Wc1 @ (W2 @ h + b2) + bc  ==  (Wc1 @ W2) @ h + (Wc1 @ b2 + bc)
    wc12 = wc1 @ w2
    bc_eff = wc1 @ b2 + bc

    # Block-diagonal "same head" mask (built once, resident in VMEM).
    hd = C // n_heads
    head_id = jnp.arange(C, dtype=jnp.int32) // hd
    headmask = (head_id[:, None] == head_id[None, :]).astype(jnp.float32)

    # Free reshapes (no transpose): channel-major, L on the lane axis.
    xr = x_rgb.reshape(N, C, L).astype(compute_dtype)
    xf = x_flow.reshape(N, C, L).astype(compute_dtype)
    cast = lambda p: p.astype(compute_dtype)
    wq, wk, wv, wr, w1, wc12, wc2 = map(cast, (wq, wk, wv, wr, w1, wc12, wc2))
    # Biases stay f32 (added to f32 accumulators; negligible traffic).

    tl = _pick_tile(L, block_l)
    n_lt = L // tl

    x_spec = pl.BlockSpec((None, C, tl), lambda n, l: (n, 0, l))
    w_spec = pl.BlockSpec((C, C), lambda n, l: (0, 0))
    b_spec = pl.BlockSpec((C, 1), lambda n, l: (0, 0))
    ctx_spec = pl.BlockSpec((None, C, C), lambda n, l: (n, 0, 0))

    # Stage 1: per-batch, head-masked (C, C) context from x_flow.
    ctx = pl.pallas_call(
        _ctx_kernel,
        out_shape=jax.ShapeDtypeStruct((N, C, C), jnp.float32),
        grid=(N, n_lt),
        in_specs=[x_spec, w_spec, b_spec, w_spec, b_spec, w_spec],
        out_specs=ctx_spec,
        scratch_shapes=[pltpu.VMEM((C, 1), jnp.float32),   # running max
                        pltpu.VMEM((C, 1), jnp.float32),   # running denom
                        pltpu.VMEM((C, C), jnp.float32)],  # running ctx
        compiler_params=pltpu.CompilerParams(
            dimension_semantics=("parallel", "arbitrary"),
            vmem_limit_bytes=vmem_limit_bytes),
    )(xf, wk, bk, wv, bv, headmask)

    # Stage 2: stream x_rgb tiles -> attention readout + FFN + final conv.
    out = pl.pallas_call(
        _stream_kernel,
        out_shape=jax.ShapeDtypeStruct((N, C, L), jnp.float32),
        grid=(N, n_lt),
        in_specs=[x_spec, ctx_spec, w_spec,   # x_rgb, ctx^T, head mask
                  w_spec, b_spec,             # Wq, bq
                  w_spec, b_spec,             # Wr, br
                  w_spec, b_spec,             # W1, b1
                  w_spec, w_spec, b_spec],    # Wc1@W2, Wc2, Wc1@b2+bc
        out_specs=x_spec,
        compiler_params=pltpu.CompilerParams(
            dimension_semantics=("parallel", "parallel"),
            vmem_limit_bytes=vmem_limit_bytes),
    )(xr, ctx, headmask, wq, bq, wr, br, w1, b1, wc12, wc2, bc_eff)

    return out.reshape(N, C, T, H, W)


# ----------------------------------------------------------------------------
# Pure-JAX reference (same channel-major math, unfolded) for a sanity check.
# ----------------------------------------------------------------------------
def _reference_forward(x_rgb, x_flow, params, *, n_heads):
    (wq, bq, wk, bk, wv, bv, wr, br,
     w1, b1, w2, b2, wc1, wc2, bc) = params
    N, C, T, H, W = x_rgb.shape
    L = T * H * W
    xr = x_rgb.reshape(N, C, L)
    xf = x_flow.reshape(N, C, L)
    hd = C // n_heads

    q = jnp.einsum('oc,ncl->nol', wq, xr) + bq
    k = jnp.einsum('oc,ncl->nol', wk, xf) + bk
    v = jnp.einsum('oc,ncl->nol', wv, xf) + bv

    heads = []
    for h in range(n_heads):
        sl = slice(h * hd, (h + 1) * hd)
        kh = jax.nn.softmax(k[:, sl, :], axis=2)   # over positions L
        qh = jax.nn.softmax(q[:, sl, :], axis=1)   # over head channels
        ctx = jnp.einsum('nkl,nvl->nkv', kh, v[:, sl, :])
        heads.append(jnp.einsum('nkl,nkv->nvl', qh, ctx))
    agg = jnp.concatenate(heads, axis=1)

    attn = jnp.einsum('oc,ncl->nol', wr, agg) + br + xr
    h1 = jax.nn.relu(jnp.einsum('oc,ncl->nol', w1, attn) + b1)
    h2 = jnp.einsum('oc,ncl->nol', w2, h1) + b2
    out = (jnp.einsum('oc,ncl->nol', wc1, h2)
           + jnp.einsum('oc,ncl->nol', wc2, attn) + bc)
    return out.reshape(N, C, T, H, W)


def _init_params(key, C):
    keys = jax.random.split(key, 15)
    s = 0.3
    mat = lambda k: jax.random.normal(k, (C, C), jnp.float32) * s
    vec = lambda k: jax.random.normal(k, (C, 1), jnp.float32) * s
    return (mat(keys[0]), vec(keys[1]),     # Wq, bq
            mat(keys[2]), vec(keys[3]),     # Wk, bk
            mat(keys[4]), vec(keys[5]),     # Wv, bv
            mat(keys[6]), vec(keys[7]),     # Wr, br
            mat(keys[8]), vec(keys[9]),     # W1, b1
            mat(keys[10]), vec(keys[11]),   # W2, b2
            mat(keys[12]), mat(keys[13]),   # Wc1 (h2 half), Wc2 (attn half)
            vec(keys[14]))                  # bc


if __name__ == "__main__":
    N, C, T, H, W = 2, 8, 4, 8, 8    # L = 256 -> two 128-wide lane tiles
    n_heads = 2

    root = jax.random.PRNGKey(0)
    kx, kf, kp = jax.random.split(root, 3)
    x_rgb = jax.random.normal(kx, (N, C, T, H, W), jnp.float32)
    x_flow = jax.random.normal(kf, (N, C, T, H, W), jnp.float32)
    params = _init_params(kp, C)

    out = resnet_attn_forward(x_rgb, x_flow, params, n_heads=n_heads,
                              block_l=128)   # force the multi-tile online path
    out = jax.block_until_ready(out)

    ref = _reference_forward(x_rgb, x_flow, params, n_heads=n_heads)
    assert out.shape == (N, C, T, H, W)
    assert jnp.all(jnp.isfinite(out))
    # 5e-3: allows for the host-side Wc1@W2 fold re-association under the
    # default (reduced-precision) f32 MXU path; structural errors are O(1).
    assert jnp.allclose(out, ref, rtol=5e-3, atol=5e-3)

    print("KERNEL_OK")
</pallas_src>

<mosaic_0001>
module attributes {stable_mosaic.version = 11 : i64} {
  func.func @_ctx_kernel(%arg0: i32, %arg1: i32, %arg2: memref<1x8x128xf32, #tpu.memory_space<vmem>>, %arg3: memref<8x8xf32, #tpu.memory_space<vmem>>, %arg4: memref<8x1xf32, #tpu.memory_space<vmem>>, %arg5: memref<8x8xf32, #tpu.memory_space<vmem>>, %arg6: memref<8x1xf32, #tpu.memory_space<vmem>>, %arg7: memref<8x8xf32, #tpu.memory_space<vmem>>, %arg8: memref<1x8x8xf32, #tpu.memory_space<vmem>>, %arg9: memref<8x1xf32, #tpu.memory_space<vmem>>, %arg10: memref<8x1xf32, #tpu.memory_space<vmem>>, %arg11: memref<8x8xf32, #tpu.memory_space<vmem>>) attributes {dimension_semantics = [#tpu.dimension_semantics<parallel>, #tpu.dimension_semantics<arbitrary>], iteration_bounds = array<i64: 2, 2>, scalar_prefetch = 0 : i64, scratch_operands = 3 : i64, tpu.core_type = #tpu.core_type<tc>, window_params = [{transform_indices = @transform_0, window_bounds = array<i64: 1, 8, 128>}, {pipeline_mode = #tpu.pipeline_mode<synchronous>, transform_indices = @transform_1, window_bounds = array<i64: 8, 8>}, {pipeline_mode = #tpu.pipeline_mode<synchronous>, transform_indices = @transform_2, window_bounds = array<i64: 8, 1>}, {pipeline_mode = #tpu.pipeline_mode<synchronous>, transform_indices = @transform_3, window_bounds = array<i64: 8, 8>}, {pipeline_mode = #tpu.pipeline_mode<synchronous>, transform_indices = @transform_4, window_bounds = array<i64: 8, 1>}, {pipeline_mode = #tpu.pipeline_mode<synchronous>, transform_indices = @transform_5, window_bounds = array<i64: 8, 8>}, {transform_indices = @transform_6, window_bounds = array<i64: 1, 8, 8>}]} {
    %c0_i32 = arith.constant 0 : i32
    %0 = arith.cmpi eq, %arg1, %c0_i32 : i32
    %1 = arith.extui %0 : i1 to i32
    %c0_i32_0 = arith.constant 0 : i32
    %2 = arith.cmpi ne, %1, %c0_i32_0 : i32
    scf.if %2 {
      %cst_30 = arith.constant 0xFF800000 : f32
      %41 = vector.broadcast %cst_30 : f32 to vector<8x1xf32>
      %c0_31 = arith.constant 0 : index
      %c0_32 = arith.constant 0 : index
      %42 = vector.load %arg9[%c0_31, %c0_32] : memref<8x1xf32, #tpu.memory_space<vmem>>, vector<8x1xf32>
      tpu.vector_store %arg9[%c0_31, %c0_32], %41 {strides = array<i32>} : memref<8x1xf32, #tpu.memory_space<vmem>>, vector<8x1xf32>,
      %cst_33 = arith.constant 0.000000e+00 : f32
      %43 = vector.broadcast %cst_33 : f32 to vector<8x1xf32>
      %c0_34 = arith.constant 0 : index
      %c0_35 = arith.constant 0 : index
      %44 = vector.load %arg10[%c0_34, %c0_35] : memref<8x1xf32, #tpu.memory_space<vmem>>, vector<8x1xf32>
      tpu.vector_store %arg10[%c0_34, %c0_35], %43 {strides = array<i32>} : memref<8x1xf32, #tpu.memory_space<vmem>>, vector<8x1xf32>,
      %cst_36 = arith.constant 0.000000e+00 : f32
      %45 = vector.broadcast %cst_36 : f32 to vector<8x8xf32>
      %c0_37 = arith.constant 0 : index
      %c0_38 = arith.constant 0 : index
      %46 = vector.load %arg11[%c0_37, %c0_38] : memref<8x8xf32, #tpu.memory_space<vmem>>, vector<8x8xf32>
      tpu.vector_store %arg11[%c0_37, %c0_38], %45 {strides = array<i32>} : memref<8x8xf32, #tpu.memory_space<vmem>>, vector<8x8xf32>,
    } else {
    }
    %c0 = arith.constant 0 : index
    %c0_1 = arith.constant 0 : index
    %c0_2 = arith.constant 0 : index
    %3 = vector.load %arg2[%c0, %c0_1, %c0_2] : memref<1x8x128xf32, #tpu.memory_space<vmem>>, vector<1x8x128xf32>
    %4 = vector.shape_cast %3 : vector<1x8x128xf32> to vector<8x128xf32>
    %c0_3 = arith.constant 0 : index
    %c0_4 = arith.constant 0 : index
    %5 = vector.load %arg3[%c0_3, %c0_4] : memref<8x8xf32, #tpu.memory_space<vmem>>, vector<8x8xf32>
    %cst = arith.constant dense<0.000000e+00> : vector<8x128xf32>
    %6 = tpu.matmul %5, %4, %cst {dimension_numbers = #tpu.dot_dimension_numbers<[1], [0], [0], [1], [0, 0, 1, 1], [], []>} : vector<8x8xf32>, vector<8x128xf32>, vector<8x128xf32> -> vector<8x128xf32>
    %c0_5 = arith.constant 0 : index
    %c0_6 = arith.constant 0 : index
    %7 = vector.load %arg4[%c0_5, %c0_6] : memref<8x1xf32, #tpu.memory_space<vmem>>, vector<8x1xf32>
    %8 = vector.broadcast %7 : vector<8x1xf32> to vector<8x128xf32>
    %9 = arith.addf %6, %8 : vector<8x128xf32>
    %c0_7 = arith.constant 0 : index
    %c0_8 = arith.constant 0 : index
    %10 = vector.load %arg5[%c0_7, %c0_8] : memref<8x8xf32, #tpu.memory_space<vmem>>, vector<8x8xf32>
    %cst_9 = arith.constant dense<0.000000e+00> : vector<8x128xf32>
    %11 = tpu.matmul %10, %4, %cst_9 {dimension_numbers = #tpu.dot_dimension_numbers<[1], [0], [0], [1], [0, 0, 1, 1], [], []>} : vector<8x8xf32>, vector<8x128xf32>, vector<8x128xf32> -> vector<8x128xf32>
    %c0_10 = arith.constant 0 : index
    %c0_11 = arith.constant 0 : index
    %12 = vector.load %arg6[%c0_10, %c0_11] : memref<8x1xf32, #tpu.memory_space<vmem>>, vector<8x1xf32>
    %13 = vector.broadcast %12 : vector<8x1xf32> to vector<8x128xf32>
    %14 = arith.addf %11, %13 : vector<8x128xf32>
    %c0_12 = arith.constant 0 : index
    %c0_13 = arith.constant 0 : index
    %15 = vector.load %arg9[%c0_12, %c0_13] : memref<8x1xf32, #tpu.memory_space<vmem>>, vector<8x1xf32>
    %cst_14 = arith.constant dense<0xFF800000> : vector<8xf32>
    %16 = vector.multi_reduction <maximumf>, %9, %cst_14 [1] : vector<8x128xf32> to vector<8xf32>
    %17 = vector.shape_cast %16 : vector<8xf32> to vector<8x1xf32>
    %18 = arith.maximumf %15, %17 : vector<8x1xf32>
    %c0_15 = arith.constant 0 : index
    %c0_16 = arith.constant 0 : index
    %19 = vector.load %arg9[%c0_15, %c0_16] : memref<8x1xf32, #tpu.memory_space<vmem>>, vector<8x1xf32>
    %20 = arith.subf %19, %18 : vector<8x1xf32>
    %21 = math.exp %20 : vector<8x1xf32>
    %22 = vector.broadcast %18 : vector<8x1xf32> to vector<8x128xf32>
    %23 = arith.subf %9, %22 : vector<8x128xf32>
    %24 = math.exp %23 : vector<8x128xf32>
    %c0_17 = arith.constant 0 : index
    %c0_18 = arith.constant 0 : index
    %25 = vector.load %arg10[%c0_17, %c0_18] : memref<8x1xf32, #tpu.memory_space<vmem>>, vector<8x1xf32>
    %26 = arith.mulf %21, %25 : vector<8x1xf32>
    %cst_19 = arith.constant dense<0.000000e+00> : vector<8xf32>
    %27 = vector.multi_reduction <add>, %24, %cst_19 [1] : vector<8x128xf32> to vector<8xf32>
    %28 = vector.shape_cast %27 : vector<8xf32> to vector<8x1xf32>
    %29 = arith.addf %26, %28 : vector<8x1xf32>
    %c0_20 = arith.constant 0 : index
    %c0_21 = arith.constant 0 : index
    %30 = vector.load %arg10[%c0_20, %c0_21] : memref<8x1xf32, #tpu.memory_space<vmem>>, vector<8x1xf32>
    tpu.vector_store %arg10[%c0_20, %c0_21], %29 {strides = array<i32>} : memref<8x1xf32, #tpu.memory_space<vmem>>, vector<8x1xf32>,
    %c0_22 = arith.constant 0 : index
    %c0_23 = arith.constant 0 : index
    %31 = vector.load %arg11[%c0_22, %c0_23] : memref<8x8xf32, #tpu.memory_space<vmem>>, vector<8x8xf32>
    %32 = vector.broadcast %21 : vector<8x1xf32> to vector<8x8xf32>
    %33 = arith.mulf %32, %31 : vector<8x8xf32>
    %cst_24 = arith.constant dense<0.000000e+00> : vector<8x8xf32>
    %34 = tpu.matmul %24, %14, %cst_24 {dimension_numbers = #tpu.dot_dimension_numbers<[1], [1], [0], [0], [0, 0, 1, 0], [], []>} : vector<8x128xf32>, vector<8x128xf32>, vector<8x8xf32> -> vector<8x8xf32>
    %35 = arith.addf %33, %34 : vector<8x8xf32>
    %c0_25 = arith.constant 0 : index
    %c0_26 = arith.constant 0 : index
    %36 = vector.load %arg11[%c0_25, %c0_26] : memref<8x8xf32, #tpu.memory_space<vmem>>, vector<8x8xf32>
    tpu.vector_store %arg11[%c0_25, %c0_26], %35 {strides = array<i32>} : memref<8x8xf32, #tpu.memory_space<vmem>>, vector<8x8xf32>,
    %c0_27 = arith.constant 0 : index
    %c0_28 = arith.constant 0 : index
    %37 = vector.load %arg9[%c0_27, %c0_28] : memref<8x1xf32, #tpu.memory_space<vmem>>, vector<8x1xf32>
    tpu.vector_store %arg9[%c0_27, %c0_28], %18 {strides = array<i32>} : memref<8x1xf32, #tpu.memory_space<vmem>>, vector<8x1xf32>,
    %c1_i32 = arith.constant 1 : i32
    %38 = arith.cmpi eq, %arg1, %c1_i32 : i32
    %39 = arith.extui %38 : i1 to i32
    %c0_i32_29 = arith.constant 0 : i32
    %40 = arith.cmpi ne, %39, %c0_i32_29 : i32
    scf.if %40 {
      %c0_30 = arith.constant 0 : index
      %c0_31 = arith.constant 0 : index
      %41 = vector.load %arg11[%c0_30, %c0_31] : memref<8x8xf32, #tpu.memory_space<vmem>>, vector<8x8xf32>
      %c0_32 = arith.constant 0 : index
      %c0_33 = arith.constant 0 : index
      %42 = vector.load %arg10[%c0_32, %c0_33] : memref<8x1xf32, #tpu.memory_space<vmem>>, vector<8x1xf32>
      %43 = vector.broadcast %42 : vector<8x1xf32> to vector<8x8xf32>
      %44 = arith.divf %41, %43 : vector<8x8xf32>
      %c0_34 = arith.constant 0 : index
      %c0_35 = arith.constant 0 : index
      %45 = vector.load %arg7[%c0_34, %c0_35] : memref<8x8xf32, #tpu.memory_space<vmem>>, vector<8x8xf32>
      %46 = arith.mulf %44, %45 : vector<8x8xf32>
      %47 = tpu.transpose %46, [1, 0] : vector<8x8xf32> -> vector<8x8xf32>
      %c0_36 = arith.constant 0 : index
      %c0_37 = arith.constant 0 : index
      %c0_38 = arith.constant 0 : index
      %48 = vector.load %arg8[%c0_36, %c0_37, %c0_38] : memref<1x8x8xf32, #tpu.memory_space<vmem>>, vector<1x8x8xf32>
      %49 = vector.shape_cast %48 : vector<1x8x8xf32> to vector<8x8xf32>
      %50 = vector.shape_cast %47 : vector<8x8xf32> to vector<1x8x8xf32>
      tpu.vector_store %arg8[%c0_36, %c0_37, %c0_38], %50 {strides = array<i32>} : memref<1x8x8xf32, #tpu.memory_space<vmem>>, vector<1x8x8xf32>,
    } else {
    }
    return
  }
  func.func @transform_0(%arg0: i32, %arg1: i32) -> (i32, i32, i32) {
    %c0_i32 = arith.constant 0 : i32
    %c0_i32_0 = arith.constant 0 : i32
    return %arg0, %c0_i32, %arg1 : i32, i32, i32
  }
  func.func @transform_1(%arg0: i32, %arg1: i32) -> (i32, i32) {
    %c0_i32 = arith.constant 0 : i32
    %c0_i32_0 = arith.constant 0 : i32
    %c0_i32_1 = arith.constant 0 : i32
    return %c0_i32, %c0_i32_0 : i32, i32
  }
  func.func @transform_2(%arg0: i32, %arg1: i32) -> (i32, i32) {
    %c0_i32 = arith.constant 0 : i32
    %c0_i32_0 = arith.constant 0 : i32
    %c0_i32_1 = arith.constant 0 : i32
    return %c0_i32, %c0_i32_0 : i32, i32
  }
  func.func @transform_3(%arg0: i32, %arg1: i32) -> (i32, i32) {
    %c0_i32 = arith.constant 0 : i32
    %c0_i32_0 = arith.constant 0 : i32
    %c0_i32_1 = arith.constant 0 : i32
    return %c0_i32, %c0_i32_0 : i32, i32
  }
  func.func @transform_4(%arg0: i32, %arg1: i32) -> (i32, i32) {
    %c0_i32 = arith.constant 0 : i32
    %c0_i32_0 = arith.constant 0 : i32
    %c0_i32_1 = arith.constant 0 : i32
    return %c0_i32, %c0_i32_0 : i32, i32
  }
  func.func @transform_5(%arg0: i32, %arg1: i32) -> (i32, i32) {
    %c0_i32 = arith.constant 0 : i32
    %c0_i32_0 = arith.constant 0 : i32
    %c0_i32_1 = arith.constant 0 : i32
    return %c0_i32, %c0_i32_0 : i32, i32
  }
  func.func @transform_6(%arg0: i32, %arg1: i32) -> (i32, i32, i32) {
    %c0_i32 = arith.constant 0 : i32
    %c0_i32_0 = arith.constant 0 : i32
    %c0_i32_1 = arith.constant 0 : i32
    return %arg0, %c0_i32, %c0_i32_0 : i32, i32, i32
  }
}

</mosaic_0001>

<bundles_post_ra>
// kernel: tpu_custom_call.1
= control target key start
LH: loop header
LB: loop body
LE: loop exit
PB: predicated region body
PF: predicated region fallthrough
CT: control target
= control target key end

     0   :  { %s1265_s0 = inlined_call_operand.hbm [shape: f32[2,8,256], index: 0, kind: input, shape index: {}]   ;;  %s1266_s1 = inlined_call_operand.vmem [shape: f32[8,8], index: 1, kind: input, shape index: {}]   ;;  %s1267_s2 = inlined_call_operand.vmem [shape: f32[8,1], index: 2, kind: input, shape index: {}]   ;;  %s1268_s3 = inlined_call_operand.vmem [shape: f32[8,8], index: 3, kind: input, shape index: {}]   ;;  %s1269_s4 = inlined_call_operand.vmem [shape: f32[8,1], index: 4, kind: input, shape index: {}]   ;;  %s1270_s5 = inlined_call_operand.vmem [shape: f32[8,8], index: 5, kind: input, shape index: {}]   ;;  %s1271_s6 = inlined_call_operand.hbm [shape: f32[2,8,8], index: 6, kind: output, shape index: {}]  }
   0x1   :  { %1277 = sst [smem:[#allocation16_spill]] %s1271_s6 }
   0x2   :  { %11 = vsyncpa [#allocation6], 0 }
   0x3   :  { %13 = vsyncpa [#allocation6 + $0x1], 0 }
   0x4   :  { %14 = vsyncpa [#allocation7], 0 }
   0x5   :  { %16 = vsyncpa [#allocation7 + $0x1], 0  ;;  %s1051_s21 = smov 0   ;;  %s1053_s22 = smov 0  }
   0x6   :  { %s1055_s23 = smov 0   ;;  %s1057_s24 = smov 0  }
   0x7   :  { %s1059_s25 = smov 0   ;;  %s1061_s26 = smov 0  }
   0x8   :  { %s1063_s27 = smov 0   ;;  %s1065_s28 = smov 0  }
   0x9   :  { %s1067_s29 = smov 0   ;;  %s1069_s30 = smov 0  }
   0xa   :  { %s1071_s7 = smov 0  }
   0xb LB: > { %s701_s8 = sadd.s32 4294967295, %s1006_s7   ;;  %s702_s9 = sadd.s32 4294967294, %s1006_s7   ;;  %s1006_s7 = sphi %s1071_s7, %s22_s7   ;;  %s1002_s30 = sphi %s1069_s30, %s1304_s30   ;;  %s998_s29 = sphi %s1067_s29, %s1303_s29   ;;  %s994_s28 = sphi %s1065_s28, %s1302_s28   ;;  %s990_s27 = sphi %s1063_s27, %s1301_s27   ;;  %s986_s26 = sphi %s1061_s26, %s1300_s26   ;;  %s982_s25 = sphi %s1059_s25, %s1299_s25   ;;  %s978_s24 = sphi %s1057_s24, %s1298_s24   ;;  %s974_s23 = sphi %s1055_s23, %s1297_s23   ;;  %s970_s22 = sphi %s1053_s22, %s1296_s22   ;;  %s966_s21 = sphi %s1051_s21, %s1295_s21  }
   0xc   : > { %s31_s10 = sadd.s32 1, %s998_s29  ;;  %s34_s11 = sadd.s32 1, %s1002_s30 }
   0xd   : > { %p32_p0 = scmp.ge.s32.totalorder %s31_s10, 2  ;;  %s43_s12 = sadd.s32 1, %s986_s26 }
   0xe   : > { %p50_p1 = scmp.ne.s32.totalorder %s986_s26, %s982_s25  ;;  %p51_p2 = scmp.eq.s32.totalorder %s1006_s7, 0 }
   0xf   : > { %s1306_s10 = smov (%p32_p0, %s31_s10), 0  ;;  %s1308_s11 = smov (!%p32_p0, %s34_s11), %s1002_s30 }
  0x10   : > { %1278 = sst [smem:[#allocation11_spill]] %s1306_s10  ;;  %s39_s13 = ssub.s32 %s998_s29, %s1306_s10 }
  0x11   : > { %p1117_p3 = por %p51_p2, %p50_p1  ;;  %p36_p4 = scmp.ge.s32.totalorder %s1308_s11, 2 }
  0x12   : > { %p56_p5 = scmp.ne.s32.totalorder %s982_s25, %s978_s24  ;;  %p57_p6 = scmp.eq.s32.totalorder %s701_s8, 0 }
  0x13   : > { %s174_s15 = sadd.s32 1, %s974_s23  ;;  %s1310_s11 = smov (%p36_p4, %s1308_s11), 0 }
  0x14   : > { %1280 = sst [smem:[#allocation12_spill]] %s1310_s11  ;;  %p1125_p7 = por %p57_p6, %p56_p5 }
  0x15   : > { %p184_p8 = scmp.ne.s32.totalorder %s974_s23, %s970_s22  ;;  %s38_s17 = ssub.s32 %s1002_s30, %s1310_s11 }
  0x16   : > { %p185_p9 = scmp.eq.s32.totalorder %s701_s8, 3  ;;  %s40_s18 = sor.u32 %s39_s13, %s38_s17 }
  0x17   : > { %p172_p10 = scmp.eq.s32.totalorder %s38_s17, 0  ;;  %p41_p11 = scmp.eq.s32.totalorder %s40_s18, 0 }
  0x18   : > { %p1133_p12 = por %p185_p9, %p184_p8  ;;  %p190_p13 = scmp.ne.s32.totalorder %s970_s22, %s966_s21 }
  0x19   : > { %s1138_s20 = scalar_select %p172_p10, %s974_s23, %s174_s15  }
  0x1a   : > { %s1282_s19 = scalar_select %p1133_p12, 1, 0 }
  0x1b   : > { %1284 = sst [smem:[#allocation14_spill]] %s1138_s20  ;;  %p191_p0 = scmp.eq.s32.totalorder %s702_s9, 3 }
  0x1c   : > { %1283 = sst [smem:[#allocation13_spill]] %s1282_s19  ;;  %p752_p1 = scmp.lt.s32.totalorder %s1006_s7, 4 }
  0x1d   : > { %s1141_s24 = scalar_select %p41_p11, %s986_s26, %s43_s12  }
  0x1e   : > { %p1146_p2 = por %p191_p0, %p190_p13  ;;  %s226_s8 = sand.u32 1, %s986_s26  }
  0x1f   : > { %1285 = sst [smem:[#allocation15_spill]] %s1141_s24  ;;  %s705_s13 = sshll.u32 %s226_s8, 3 }
  0x20   : > { %s1286_s11 = scalar_select %p1146_p2, 1, 0 }
  0x21   : > { %s706_s17 = sshll.u32 %s1002_s30, 1  ;;  %s230_s10 = scalar_lea.vmem [#allocation5], %s705_s13 }
  0x22   : > { %s235_s18 = sadd.s32 %s998_s29, %s706_s17  ;;  %s239_s6 = sshll.u32 %s230_s10, 4  ;;  %s240_s6 = int_to_ptr.vmem [resolvable:$true] %s239_s6 }
  0x23   : > { %s707_s19 = sshll.u32 %s235_s18, 7  ;;  %p1158_p4 = pnand %p752_p1, %p1117_p3 }
  0x24   : > { %s237_s12 = scalar_lea.hbm %s1265_s0, %s707_s19  ;;  %p708_p5 = scmp.ge.s32.totalorder %s1006_s7, 1 }
  0x25   : > { %p244_p6 = scmp.lt.s32.totalorder %s1006_s7, 5  ;;  %s227_s24 = scalar_lea.sflag [#allocation6], %s226_s8 }
  0x26   : > { %p860_p8 = pneg %p1158_p4  ;;  %s871_s17 = scalar_lea.vmem %s240_s6, 128 }
  0x27   : > { %p872_p9 = scmp.ne.s32.totalorder %s240_s6, %s871_s17  ;;  %s1008_s10 = smov [#allocation5]  }
  0x28   : > { %s876_s13 = sshll.u32 %s1008_s10, 4  ;;  %s877_s13 = int_to_ptr.vmem [resolvable:$false] %s876_s13 }
  0x29   : > { %p874_p10 = pnand %p872_p9, %p860_p8  ;;  %s878_s20 = scalar_lea.vmem %s877_s13, 256 }
  0x2a   : > { %p879_p13 = scmp.lt.s32.totalorder %s240_s6, %s877_s13  ;;  %p880_p0 = scmp.lt.s32.totalorder %s878_s20, %s871_s17 }
  0x2b   : > { %p875_p11 = pneg %p874_p10 }
  0x2c   : > { %p881_p3 = por %p880_p0, %p879_p13 }
  0x2e   : > { %p882_p1 = pnand %p881_p3, %p875_p11 }
  0x30   : > { %885 = shalt.err (!%p882_p1)
}
  0x31   : > { %747 = dma.hbm_to_vmem [thread:$0]  (!%p1158_p4), %s237_s12, 128, %s240_s6, %s227_s24  }
  0x32   : > { %p245_p2 = pnand %p708_p5, %p244_p6 }
  0x33   : > { %s250_s14 = sand.u32 (!%p245_p2), 1, %s982_s25  }
  0x34   : > { %248 = sbr.rel (%p245_p2) target bundleno = 1037 (0x40d), region = 44  ;;  %s709_s19 = sshll.u32 (!%p245_p2), %s250_s14, 3 }
  0x35   : > { %s251_s8 = scalar_lea.sflag (!%p245_p2), [#allocation6], %s250_s14  ;;  %s254_s18 = scalar_lea.vmem (!%p245_p2), [#allocation5], %s709_s19 }
  0x39   : > { %957 = dma.done.wait (%p1125_p7), %s251_s8, 128  }
  0x3a   : > { %959 = vsyncadd (%p1125_p7), %s251_s8, 4294967168  ;;  %s280_s15 = sand.u32 1, %s970_s22   ;;  %p711_p2 = scmp.ne.s32.totalorder %s990_s27, 0 }
  0x3b   : > { %s1180_s6 = sshll.u32 %s280_s15, 3 }
  0x3c   : > { %s282_s24 = scalar_lea.vmem [#allocation8], %s1180_s6  ;;  %286 = sbr.rel (%p711_p2) target bundleno = 68 (0x44), region = 52 }
  0x41   : > { %vm287_vm0 = vcmask 7168   ;;  %vm290_vm1 = vcmask 64512   ;;  %v1009_v0 = vmov -inf   ;;  %v1010_v1 = vmov 0.0  }
  0x42   : > { %288 = vst.msk [vmem:[#allocation2] sm:$0xff] %vm287_vm0, %v1009_v0  ;;  %289 = vst.msk [vmem:[#allocation3] sm:$0xff] %vm287_vm0, %v1010_v1 }
  0x43   : > { %291 = vst.msk [vmem:[#allocation4] sm:$0xff] %vm290_vm1, %v1010_v1 }
  0x44 PF: > { %v292_v2 = vld [vmem:[%s254_s18] sm:$0xff]  ;;  %vm300_vm2 = vcmask 64512   ;;  %v1011_v4 = vmov 0.0   ;;  %vm1012_vm3 = vmmov 0   ;;  %v1013_v6 = vmov 0   ;;  %p714_p7 = scmp.ne.s32.totalorder %s990_s27, 1 }
  0x45   : > { %v293_v3 = vld [vmem:[%s1266_s1] sm:$0xff]  ;;  %725 = vmatprep.subr.mxu0 %v1011_v4  ;;  %727 = vmatprep.mubr.msk.f32.mxu0 %vm1012_vm3, %v1011_v4  ;;  %vm474_vm4 = vcmask 7168  }
  0x46   : > { %v294_v5 = vld [vmem:[%s1267_s2] sm:$0xff]  ;;  %726 = vmatpush3.msra.mxu0 %v292_v2  ;;  %849 = vset.pattern.permute.xlu0 %v1013_v6 }
  0x47   : > { %728 = vmatmul.mubr.msk.f32.vlgmr.msra.gmra.mxu0 %vm300_vm2, %v293_v3  ;;  %297 = vperm.xlu0 %849, %v294_v5   ;;  %v374_v7 = vld [vmem:[%s1268_s3] sm:$0xff] }
  0x48   : > { %730 = vmatprep.subr.mxu1 %v1011_v4  ;;  %732 = vmatprep.mubr.msk.f32.mxu1 %vm1012_vm3, %v1011_v4  ;;  %v375_v17 = vld [vmem:[%s1269_s4] sm:$0xff] }
  0x49   : > { %731 = vmatpush3.msra.mxu1 %v292_v2  ;;  %850 = vset.pattern.permute.xlu1 %v1013_v6  ;;  %v454_v12 = vld [vmem:[#allocation2] sm:$0xff]  ;;  %v469_v27 = vld [vmem:[#allocation3] sm:$0xff] }
  0x4a   : > { %735 = vmatprep.subr.mxu0 %v1011_v4  ;;  %737 = vmatprep.mubr.msk.f32.mxu0 %vm1012_vm3, %v1011_v4  ;;  %v476_v31 = vld [vmem:[#allocation4] sm:$0xff] }
  0x4b   : > { %733 = vmatmul.mubr.msk.f32.vlgmr.msra.gmra.mxu1 %vm300_vm2, %v374_v7 }
  0xc2   : > { %v298_v8 = vpop.permute.xlu0 %297 }
 0x107   : > { %v370_v9 = vpop.f32.mrf.mxu0 }
 0x108   : > { %v371_v10 = vadd.f32 %v370_v9, %v298_v8 }
 0x109   : > { %v729_v11 = vpop.f32.mrf.mxu0 }
 0x10a   : > { %455 = vmax.xlane.f32.xlu0 %v371_v10 }
 0x10b   : > { %v450_v15 = vpop.f32.mrf.mxu1 }
 0x10d   : > { %v734_v18 = vpop.f32.mrf.mxu1 }
 0x193   : > { %v456_v13 = vpop.xlane.xlu0 %455 }
 0x194   : > { %v457_v14 = vmax.f32 %v454_v12, %v456_v13 }
 0x196   : > { %v458_v16 = vsub.f32 %v454_v12, %v457_v14  ;;  %555 = vst.msk [vmem:[#allocation2] sm:$0xff] %vm474_vm4, %v457_v14  ;;  %463 = vperm.xlu1 %850, %v457_v14  }
 0x198   : > { %v459_v19 = vmul.f32 1.442695, %v458_v16 }
 0x19a   : > { %851 = vpow2.f32 %v459_v19  ;;  %378 = vperm.xlu1 %850, %v375_v17  }
 0x1a7   : > { %v852_v20 = vpop.eup %851 }
 0x1a8   : > { %479 = vperm.xlu0 %849, %v852_v20   ;;  %v470_v28 = vmul.f32 %v852_v20, %v469_v27 }
 0x211   : > { %v464_v21 = vpop.permute.xlu1 %463 }
 0x212   : > { %v466_v22 = vsub.f32 %v371_v10, %v464_v21 }
 0x214   : > { %v467_v23 = vmul.f32 1.442695, %v466_v22 }
 0x215   : > { %v379_v24 = vpop.permute.xlu1 %378 }
 0x216   : > { %853 = vpow2.f32 %v467_v23  ;;  %v451_v25 = vadd.f32 %v450_v15, %v379_v24 }
 0x218   : > { %736 = vmatpush3.xpose.msra.mxu0 %v451_v25 }
 0x223   : > { %v854_v26 = vpop.eup %853  ;;  %v480_v32 = vpop.permute.xlu0 %479 }
 0x224   : > { %471 = vadd.xlane.f32.xlu1 %v854_v26  ;;  %738 = vmatmul.mubr.f32.vlgmr.msra.gmra.mxu0 %v854_v26  ;;  %v482_v33 = vmul.f32 %v480_v32, %v476_v31 }
 0x2ad   : > { %v472_v29 = vpop.xlane.xlu1 %471 }
 0x2ae   : > { %v473_v30 = vadd.f32 %v472_v29, %v470_v28 }
 0x2b0   : > { %475 = vst.msk [vmem:[#allocation3] sm:$0xff] %vm474_vm4, %v473_v30 }
 0x2e3   : > { %559 = sbr.rel (%p714_p7) target bundleno = 1014 (0x3f6), region = 56 }
 0x2e4   : > { %v549_v34 = vpop.f32.mrf.mxu0 }
 0x2e5   : > { %v553_v35 = vadd.f32 %v549_v34, %v482_v33 }
 0x2e6   : > { %v739_v36 = vpop.f32.mrf.mxu0 }
 0x2e7   : > { %554 = vst.msk [vmem:[#allocation4] sm:$0xff] %vm300_vm2, %v553_v35 }
 0x2e8   : > { %v561_v37 = vld [vmem:[#allocation3] sm:$0xff]  ;;  %v1014_v38 = vmov 0   ;;  %v569_v42 = vld [vmem:[%s1270_s5] sm:$0xff] }
 0x2e9   : > { %855 = vset.pattern.permute.xlu0 %v1014_v38 }
 0x2ea   : > { %564 = vperm.xlu0 %855, %v561_v37  }
 0x2ee   : > { %v560_v40 = vld [vmem:[#allocation4] sm:$0xff] }
 0x365   : > { %v565_v39 = vpop.permute.xlu0 %564 }
 0x366   : > { %856 = vrcp.f32 %v565_v39 }
 0x373   : > { %v857_v41 = vpop.eup %856 }
 0x374   : > { %v568_v43 = vmul.f32 %v857_v41, %v560_v40 }
 0x376   : > { %v570_v44 = vmul.f32 %v569_v42, %v568_v43 }
 0x378   : > { %571 = vxpose.xlu0.b32.start.end [1/1] (short) (narrow) %v570_v44, 8 }
 0x3f4   : > { %v587_v45 = vpop.trf.xlu0 }
 0x3f5   : > { %603 = vst.msk [vmem:[%s282_s24] sm:$0xff] %vm300_vm2, %v587_v45 }
 0x3f6 PF: > { %s716_s18 = sshll.u32 %s994_s28, 7  ;;  %s1289_s9 = sld [smem:[#allocation16_spill]] }
 0x3f7   : > { %s618_s10 = sshll.u32 %s282_s24, 4  ;;  %s605_s13 = scalar_lea.sflag [#allocation7], %s280_s15  ;;  %s619_s10 = int_to_ptr.vmem [resolvable:$true] %s618_s10 }
 0x3f8   : > { %s886_s20 = scalar_lea.vmem %s619_s10, 128  ;;  %s1015_s14 = smov [#allocation8]  }
 0x3f9   : > { %p887_p4 = scmp.ne.s32.totalorder %s619_s10, %s886_s20  ;;  %s890_s19 = sshll.u32 %s1015_s14, 4  ;;  %s891_s19 = int_to_ptr.vmem [resolvable:$false] %s890_s19 }
 0x3fa   : > { %s892_s8 = scalar_lea.vmem %s891_s19, 256  ;;  %p893_p8 = scmp.lt.s32.totalorder %s619_s10, %s891_s19 }
 0x3fb   : > { %p888_p5 = pnand %p887_p4, %p1133_p12  ;;  %p894_p9 = scmp.lt.s32.totalorder %s892_s8, %s886_s20 }
 0x3fc   : > { %s616_s17 = scalar_lea.hbm %s1289_s9, %s716_s18 }
 0x3fd   : > { %p889_p6 = pneg %p888_p5  ;;  %p895_p10 = por %p894_p9, %p893_p8 }
 0x3ff   : > { %p896_p11 = pnand %p895_p10, %p889_p6 }
 0x401   : > { %899 = shalt.err (!%p896_p11)
}
 0x402   : > { %s900_s28 = scalar_lea.hbm %s616_s17, 128  ;;  %s904_s24 = scalar_lea.hbm %s1289_s9, 256 }
 0x403   : > { %p901_p13 = scmp.ne.s32.totalorder %s616_s17, %s900_s28  ;;  %p905_p1 = scmp.lt.s32.totalorder %s616_s17, %s1289_s9 }
 0x404   : > { %p906_p2 = scmp.lt.s32.totalorder %s904_s24, %s900_s28 }
 0x405   : > { %p902_p0 = pnand %p901_p13, %p1133_p12 }
 0x406   : > { %p907_p7 = por %p906_p2, %p905_p1 }
 0x407   : > { %p903_p3 = pneg %p902_p0 }
 0x409   : > { %p908_p4 = pnand %p907_p7, %p903_p3 }
 0x40b   : > { %911 = shalt.err (!%p908_p4)
}
 0x40c   : > { %742 = dma.vmem_to_hbm [thread:$0]  (%p1133_p12), %s619_s10, 128, %s616_s17, %s605_s13  }
 0x40d PF: > { %p753_p5 = scmp.ge.s32.totalorder %s1006_s7, 2  ;;  %s630_s12 = sand.u32 1, %s966_s21  }
 0x40e   : > { %p1290_p6 = scmp.ne.s32.totalorder %s1286_s11, 0  ;;  %s631_s20 = scalar_lea.sflag [#allocation7], %s630_s12 }
 0x410   : > { %p749_p8 = pnand %p753_p5, %p1290_p6 }
 0x412   : > { %p750_p9 = pneg %p749_p8 }
 0x414   : > { %961 = dma.done.wait (%p750_p9), %s631_s20, 128  }
 0x415   : > { %963 = vsyncadd (%p750_p9), %s631_s20, 4294967168  ;;  %s22_s7 = sadd.s32 1, %s1006_s7   ;;  %s1291_s14 = sld [smem:[#allocation14_spill]] }
 0x416   : > { %p19_p10 = scmp.ge.s32.totalorder %s22_s7, 6   ;;  %s1292_s27 = sld [smem:[#allocation15_spill]] }
 0x417   : > { %s1293_s17 = sld [smem:[#allocation11_spill]]  ;;  %s1295_s21 = smov %s970_s22 }
 0x418   : > { %s1294_s10 = sld [smem:[#allocation12_spill]]  ;;  %s1296_s22 = smov %s974_s23 }
 0x419   : > { %s1298_s24 = smov %s982_s25  ;;  %s1299_s25 = smov %s986_s26 }
 0x41a   : > { %s1302_s28 = smov %s1002_s30  ;;  %21 = sbr.rel (!%p19_p10) target bundleno = 11 (0xb), region = 97 }
 0x41b   : > { %s1297_s23 = smov %s1291_s14 }
 0x41c   : > { %s1300_s26 = smov %s1292_s27  ;;  %s1301_s27 = smov %s998_s29 }
 0x41d   : > { %s1303_s29 = smov %s1293_s17 }
 0x41e   : > { %s1304_s30 = smov %s1294_s10 }
 0x41f   :  { %636 = vsyncpa [#allocation6], 1 }
 0x420   :  { %638 = vsyncpa [#allocation6 + $0x1], 1 }
 0x421   :  { %639 = vsyncpa [#allocation7], 1 }
 0x422   :  { %641 = vsyncpa [#allocation7 + $0x1], 1 }

</bundles_post_ra>
